<compile_context>
chip_gen: v7x
topology: tpu7x:2x2x1
jax: 0.10.0
libtpu: 0.0.40
codegen_flags: <defaults>
</compile_context>

<pallas_src>
import functools
import math

import jax
import jax.numpy as jnp
from jax import lax
from jax.experimental import pallas as pl
from jax.experimental.pallas import tpu as pltpu


# --------------------------------------------------------------------------- #
# Hardware / tiling helpers                                                    #
# --------------------------------------------------------------------------- #
def _sublane_pack(dtype):
    return {1: 32, 2: 16, 4: 8}.get(jnp.dtype(dtype).itemsize, 8)


@functools.lru_cache(maxsize=None)
def _vmem_limit_bytes():
    """Generation-aware VMEM limit: 3/4 of physical capacity (96 MiB on
    v5e/v6e's 128 MiB, 48 MiB on v7x's 64 MiB); conservative fallback."""
    try:
        cap = int(pltpu.get_tpu_info().vmem_capacity_bytes)
    except Exception:
        cap = 64 * 1024 * 1024
    return max(32 * 1024 * 1024, (3 * cap) // 4)


@functools.lru_cache(maxsize=None)
def _buffered_weights_ok():
    """Probe whether pl.BlockSpec(pipeline_mode=pl.Buffered(1)) is supported
    so constant weight blocks are not pointlessly double-buffered."""
    def _copy(x_ref, o_ref):
        o_ref[...] = x_ref[...]
    try:
        spec = pl.BlockSpec((8, 128), lambda i: (0, 0),
                            pipeline_mode=pl.Buffered(1))
        out = pl.pallas_call(
            _copy,
            out_shape=jax.ShapeDtypeStruct((8, 128), jnp.float32),
            grid=(1,),
            in_specs=[spec],
            out_specs=pl.BlockSpec((8, 128), lambda i: (0, 0)),
        )(jnp.ones((8, 128), jnp.float32))
        jax.block_until_ready(out)
        return True
    except Exception:
        return False


def _const_weight_spec(shape):
    """BlockSpec for a grid-invariant (weight) operand: constant index map,
    single-buffered when the runtime supports it."""
    idx = lambda *_: (0,) * len(shape)
    if _buffered_weights_ok():
        return pl.BlockSpec(shape, idx, pipeline_mode=pl.Buffered(1))
    return pl.BlockSpec(shape, idx)


def _weight_buffer_count():
    return 1 if _buffered_weights_ok() else 2


def _pick_block_rows(n_rows, act_bytes_per_row, resident_bytes, dtype,
                     max_rows=1024):
    """Largest dtype-aligned row tile whose double-buffered activation
    footprint fits VMEM after the resident weight blocks + headroom."""
    pack = _sublane_pack(dtype)
    budget = max(_vmem_limit_bytes() - resident_bytes - (8 << 20), 1 << 20)
    fit = max(pack, budget // max(2 * act_bytes_per_row, 1))
    block = min(n_rows, fit, max_rows)
    if block < n_rows:
        block = max(pack, (block // pack) * pack)
    return int(block)


# --------------------------------------------------------------------------- #
# One-time parameter preparation (NO per-call weight transposes)               #
# --------------------------------------------------------------------------- #
def prepare_params(params):
    """Stack per-head QKV weights into one (embed, 3*proj) panel and
    pre-transpose the nn.Linear weights to (in, out) once, at setup time."""
    n_head, embed, head_dim = params["wq"].shape
    proj = n_head * head_dim
    hid = params["w1"].shape[0]

    def stack_w(w):  # (h, e, d) -> (e, h*d)
        return jnp.transpose(w, (1, 0, 2)).reshape(embed, proj)

    def stack_b(b):  # (h, 1, d) -> (1, h*d)
        return jnp.transpose(b, (1, 0, 2)).reshape(1, proj)

    wqkv = jnp.concatenate(
        [stack_w(params["wq"]), stack_w(params["wk"]), stack_w(params["wv"])],
        axis=-1)
    bqkv = jnp.concatenate(
        [stack_b(params["bq"]), stack_b(params["bk"]), stack_b(params["bv"])],
        axis=-1)
    return {
        "n_head": int(n_head), "head_dim": int(head_dim),
        "ln1_w": params["ln1_w"].reshape(1, embed),
        "ln2_w": params["ln2_w"].reshape(1, embed),
        "wqkv": wqkv, "bqkv": bqkv,
        "wo_t": jnp.transpose(params["wo"]), "bo": params["bo"].reshape(1, embed),
        "w1_t": jnp.transpose(params["w1"]), "b1": params["b1"].reshape(1, hid),
        "w2_t": jnp.transpose(params["w2"]), "b2": params["b2"].reshape(1, hid),
        "w3_t": jnp.transpose(params["w3"]), "b3": params["b3"].reshape(1, embed),
    }


# --------------------------------------------------------------------------- #
# Kernel 1: RMSNorm(ln1) + fused QKV projection (single matmul)                #
# --------------------------------------------------------------------------- #
def _rmsnorm_qkv_kernel(x_ref, lnw_ref, w_ref, b_ref, q_ref, k_ref, v_ref,
                        *, eps, proj):
    xf = x_ref[...].astype(jnp.float32)
    ms = jnp.mean(xf * xf, axis=-1, keepdims=True)
    xn = (xf * lax.rsqrt(ms + eps)).astype(x_ref.dtype) * lnw_ref[...]
    y = jnp.dot(xn, w_ref[...], preferred_element_type=jnp.float32) + b_ref[...]
    q_ref[...] = y[:, :proj].astype(q_ref.dtype)
    k_ref[...] = y[:, proj:2 * proj].astype(k_ref.dtype)
    v_ref[...] = y[:, 2 * proj:].astype(v_ref.dtype)


def _rmsnorm_qkv(x, ln1_w, wqkv, bqkv, *, eps):
    bsz, seq, embed = x.shape
    proj3 = wqkv.shape[1]
    proj = proj3 // 3
    n_rows = bsz * seq
    x2 = x.reshape(n_rows, embed)

    itemsize = jnp.dtype(x.dtype).itemsize
    resident = (embed * proj3 + proj3 + embed) * itemsize * _weight_buffer_count()
    act_row = (embed + proj3) * itemsize + 4 * proj3
    br = _pick_block_rows(n_rows, act_row, resident, x.dtype)

    out_sds = jax.ShapeDtypeStruct((n_rows, proj), x.dtype)
    row_out = lambda: pl.BlockSpec((br, proj), lambda i: (i, 0))
    q, k, v = pl.pallas_call(
        functools.partial(_rmsnorm_qkv_kernel, eps=eps, proj=proj),
        out_shape=(out_sds, out_sds, out_sds),
        grid=(pl.cdiv(n_rows, br),),
        in_specs=[
            pl.BlockSpec((br, embed), lambda i: (i, 0)),
            _const_weight_spec((1, embed)),
            _const_weight_spec((embed, proj3)),
            _const_weight_spec((1, proj3)),
        ],
        out_specs=(row_out(), row_out(), row_out()),
        compiler_params=pltpu.CompilerParams(
            dimension_semantics=("parallel",),
            vmem_limit_bytes=_vmem_limit_bytes()),
    )(x2, ln1_w, wqkv, bqkv)
    return (q.reshape(bsz, seq, proj), k.reshape(bsz, seq, proj),
            v.reshape(bsz, seq, proj))


# --------------------------------------------------------------------------- #
# Kernel 2: flash-style causal attention + out-projection + residual           #
# --------------------------------------------------------------------------- #
def _flash_attention_kernel(q_ref, k_ref, v_ref, x_ref, wo_ref, bo_ref, o_ref,
                            m_sc, l_sc, acc_sc, ctx_sc,
                            *, n_head, head_dim, tq, tk, seq, scale):
    qi = pl.program_id(1)
    ki = pl.program_id(2)
    q_start = qi * tq
    k_start = ki * tk

    @pl.when(ki == 0)
    def _init():
        m_sc[...] = jnp.full_like(m_sc, -jnp.inf)
        l_sc[...] = jnp.zeros_like(l_sc)
        acc_sc[...] = jnp.zeros_like(acc_sc)

    # Skip KV tiles that lie entirely above the causal diagonal for this q tile
    # (their DMA is also skipped via the clamped index_map in the wrapper).
    @pl.when(k_start <= q_start + tq - 1)
    def _update():
        q = q_ref[0].astype(jnp.float32)          # (tq, n_head*head_dim)
        k = k_ref[0].astype(jnp.float32)          # (tk, n_head*head_dim)
        v = v_ref[0].astype(jnp.float32)
        if seq % tk != 0:
            # Zero OOB-padded KV rows of the last partial tile so that
            # p(=0) * garbage(inf/NaN) cannot contaminate valid rows.
            kv_valid = (k_start
                        + lax.broadcasted_iota(jnp.int32, (tk, 1), 0)) < seq
            v = jnp.where(kv_valid, v, 0.0)
        rows = q_start + lax.broadcasted_iota(jnp.int32, (tq, tk), 0)
        cols = k_start + lax.broadcasted_iota(jnp.int32, (tq, tk), 1)
        causal = cols <= rows
        for h in range(n_head):                   # static unroll over heads
            sl = slice(h * head_dim, (h + 1) * head_dim)
            s = lax.dot_general(q[:, sl], k[:, sl], (((1,), (1,)), ((), ())),
                                preferred_element_type=jnp.float32) * scale
            s = jnp.where(causal, s, -jnp.inf)
            m_prev = m_sc[h]
            m_new = jnp.maximum(m_prev, jnp.max(s, axis=-1, keepdims=True))
            alpha = jnp.exp(m_prev - m_new)
            p = jnp.exp(s - m_new)
            l_sc[h] = alpha * l_sc[h] + jnp.sum(p, axis=-1, keepdims=True)
            acc_sc[h] = alpha * acc_sc[h] + jnp.dot(
                p, v[:, sl], preferred_element_type=jnp.float32)
            m_sc[h] = m_new

    @pl.when(ki == pl.num_programs(2) - 1)
    def _finalize():
        # Deferred softmax normalization (EUP reciprocal); per-head contexts
        # gathered into one lane-dense (tq, proj) scratch, then fused output
        # projection + bias + residual and a single lane-dense store.
        for h in range(n_head):
            sl = slice(h * head_dim, (h + 1) * head_dim)
            ctx_sc[:, sl] = acc_sc[h] * pl.reciprocal(l_sc[h], approx=True)
        y = jnp.dot(ctx_sc[...].astype(wo_ref.dtype), wo_ref[...],
                    preferred_element_type=jnp.float32)
        y = y + bo_ref[...] + x_ref[0].astype(jnp.float32)
        o_ref[0] = y.astype(o_ref.dtype)


def _flash_attention_outproj(q, k, v, x, wo_t, bo, *, n_head, head_dim):
    bsz, seq, proj = q.shape
    embed = x.shape[-1]
    # q tiles >= 256 on the deep-MXU parts when seq allows; full seq otherwise.
    tq = min(seq, 256)
    tk = min(seq, 256)
    n_q = pl.cdiv(seq, tq)
    n_kv = pl.cdiv(seq, tk)
    scale = 1.0 / math.sqrt(head_dim)

    def q_index(b, qi, ki):
        return (b, qi, 0)

    def kv_index(b, qi, ki):
        # Clamp fully-masked (causal) KV tiles onto the last useful one so the
        # pipeline never re-DMAs data the kernel is going to skip.
        return (b, jnp.minimum(ki, (qi * tq + tq - 1) // tk), 0)

    kernel = functools.partial(
        _flash_attention_kernel, n_head=n_head, head_dim=head_dim,
        tq=tq, tk=tk, seq=seq, scale=scale)
    return pl.pallas_call(
        kernel,
        out_shape=jax.ShapeDtypeStruct((bsz, seq, embed), x.dtype),
        grid=(bsz, n_q, n_kv),
        in_specs=[
            pl.BlockSpec((1, tq, proj), q_index),
            pl.BlockSpec((1, tk, proj), kv_index),
            pl.BlockSpec((1, tk, proj), kv_index),
            pl.BlockSpec((1, tq, embed), q_index),
            _const_weight_spec((proj, embed)),
            _const_weight_spec((1, embed)),
        ],
        out_specs=pl.BlockSpec((1, tq, embed), q_index),
        scratch_shapes=[
            pltpu.VMEM((n_head, tq, 1), jnp.float32),          # running max
            pltpu.VMEM((n_head, tq, 1), jnp.float32),          # running sum
            pltpu.VMEM((n_head, tq, head_dim), jnp.float32),   # running ctx
            pltpu.VMEM((tq, proj), jnp.float32),               # gathered ctx
        ],
        compiler_params=pltpu.CompilerParams(
            dimension_semantics=("parallel", "parallel", "arbitrary"),
            vmem_limit_bytes=_vmem_limit_bytes()),
    )(q, k, v, x, wo_t, bo)


# --------------------------------------------------------------------------- #
# Kernel 3: FFN (silu gate) + residual + RMSNorm(ln2)                          #
# --------------------------------------------------------------------------- #
def _ffn_residual_rmsnorm_kernel(h_ref, w1_ref, b1_ref, w2_ref, b2_ref,
                                 w3_ref, b3_ref, lnw_ref, o_ref, *, eps):
    h = h_ref[...]
    a = jnp.dot(h, w1_ref[...], preferred_element_type=jnp.float32) + b1_ref[...]
    b = jnp.dot(h, w2_ref[...], preferred_element_type=jnp.float32) + b2_ref[...]
    # silu(a) * b with the divide moved onto the EUP (exp + reciprocal).
    g = a * pl.reciprocal(1.0 + jnp.exp(-a), approx=True) * b
    y = jnp.dot(g.astype(w3_ref.dtype), w3_ref[...],
                preferred_element_type=jnp.float32) + b3_ref[...]
    z = y + h.astype(jnp.float32)                                  # residual
    ms = jnp.mean(z * z, axis=-1, keepdims=True)                   # RMSNorm f32
    zn = (z * lax.rsqrt(ms + eps)).astype(o_ref.dtype)
    o_ref[...] = (zn * lnw_ref[...]).astype(o_ref.dtype)


def _ffn_residual_rmsnorm(h, w1_t, b1, w2_t, b2, w3_t, b3, ln2_w, *, eps):
    bsz, seq, embed = h.shape
    hid = w1_t.shape[1]
    n_rows = bsz * seq
    h2 = h.reshape(n_rows, embed)

    itemsize = jnp.dtype(h.dtype).itemsize
    resident = ((3 * embed * hid) + 2 * hid + 2 * embed
                ) * itemsize * _weight_buffer_count()
    act_row = 2 * embed * itemsize + 4 * (3 * hid + 2 * embed)
    br = _pick_block_rows(n_rows, act_row, resident, h.dtype)

    out = pl.pallas_call(
        functools.partial(_ffn_residual_rmsnorm_kernel, eps=eps),
        out_shape=jax.ShapeDtypeStruct((n_rows, embed), h.dtype),
        grid=(pl.cdiv(n_rows, br),),
        in_specs=[
            pl.BlockSpec((br, embed), lambda i: (i, 0)),
            _const_weight_spec((embed, hid)),
            _const_weight_spec((1, hid)),
            _const_weight_spec((embed, hid)),
            _const_weight_spec((1, hid)),
            _const_weight_spec((hid, embed)),
            _const_weight_spec((1, embed)),
            _const_weight_spec((1, embed)),
        ],
        out_specs=pl.BlockSpec((br, embed), lambda i: (i, 0)),
        compiler_params=pltpu.CompilerParams(
            dimension_semantics=("parallel",),
            vmem_limit_bytes=_vmem_limit_bytes()),
    )(h2, w1_t, b1, w2_t, b2, w3_t, b3, ln2_w)
    return out.reshape(bsz, seq, embed)


# --------------------------------------------------------------------------- #
# Full TransformerBlock forward (mask=True)                                    #
# --------------------------------------------------------------------------- #
def transformer_block(x, prep, *, eps=1e-6):
    q, k, v = _rmsnorm_qkv(x, prep["ln1_w"], prep["wqkv"], prep["bqkv"], eps=eps)
    h = _flash_attention_outproj(q, k, v, x, prep["wo_t"], prep["bo"],
                                 n_head=prep["n_head"],
                                 head_dim=prep["head_dim"])
    return _ffn_residual_rmsnorm(h, prep["w1_t"], prep["b1"], prep["w2_t"],
                                 prep["b2"], prep["w3_t"], prep["b3"],
                                 prep["ln2_w"], eps=eps)


# --------------------------------------------------------------------------- #
# Pure-JAX reference of the PyTorch module                                     #
# --------------------------------------------------------------------------- #
def _reference_block(x, params, *, eps=1e-6):
    def rmsnorm(v, w):
        vf = v.astype(jnp.float32)
        return (vf * lax.rsqrt(jnp.mean(vf * vf, -1, keepdims=True) + eps)
                ).astype(v.dtype) * w

    xn = rmsnorm(x, params["ln1_w"])
    q = jnp.einsum("bse,hed->bhsd", xn, params["wq"]) + params["bq"][None]
    k = jnp.einsum("bse,hed->bhsd", xn, params["wk"]) + params["bk"][None]
    v = jnp.einsum("bse,hed->bhsd", xn, params["wv"]) + params["bv"][None]
    bsz, n_head, seq, head_dim = q.shape
    s = jnp.einsum("bhqd,bhkd->bhqk", q, k)
    mask = jnp.triu(jnp.ones((seq, seq), dtype=bool), k=1)
    s = jnp.where(mask[None, None], -jnp.inf, s)
    p = jax.nn.softmax(s / jnp.sqrt(jnp.float32(head_dim)), axis=-1)
    ctx = jnp.einsum("bhqk,bhkd->bhqd", p, v)
    ctx = jnp.transpose(ctx, (0, 2, 1, 3)).reshape(bsz, seq, n_head * head_dim)
    att_out = ctx @ params["wo"].T + params["bo"]
    h = att_out + x
    a = h @ params["w1"].T + params["b1"]
    b = h @ params["w2"].T + params["b2"]
    y = (jax.nn.silu(a) * b) @ params["w3"].T + params["b3"]
    return rmsnorm(y + h, params["ln2_w"])


if __name__ == "__main__":
    batch, seq, embed, n_head, feed_hid = 2, 8, 32, 4, 64
    head_dim = embed // n_head

    key = jax.random.PRNGKey(0)
    keys = jax.random.split(key, 16)

    def xavier(k, shape, fan_in, fan_out):
        lim = math.sqrt(6.0 / (fan_in + fan_out))
        return jax.random.uniform(k, shape, jnp.float32, -lim, lim)

    params = {
        "ln1_w": jnp.ones((embed,), jnp.float32),
        "ln2_w": jnp.ones((embed,), jnp.float32),
        # MultiLinear params (per-head), PyTorch shapes.
        "wq": xavier(keys[0], (n_head, embed, head_dim), embed, head_dim),
        "bq": 0.01 * jax.random.normal(keys[1], (n_head, 1, head_dim), jnp.float32),
        "wk": xavier(keys[2], (n_head, embed, head_dim), embed, head_dim),
        "bk": 0.01 * jax.random.normal(keys[3], (n_head, 1, head_dim), jnp.float32),
        "wv": xavier(keys[4], (n_head, embed, head_dim), embed, head_dim),
        "bv": 0.01 * jax.random.normal(keys[5], (n_head, 1, head_dim), jnp.float32),
        # nn.Linear params, PyTorch (out, in) layout.
        "wo": xavier(keys[6], (embed, embed), embed, embed),
        "bo": 0.1 * jax.random.normal(keys[7], (embed,), jnp.float32),
        "w1": xavier(keys[8], (feed_hid, embed), embed, feed_hid),
        "b1": 0.1 * jax.random.normal(keys[9], (feed_hid,), jnp.float32),
        "w2": xavier(keys[10], (feed_hid, embed), embed, feed_hid),
        "b2": 0.1 * jax.random.normal(keys[11], (feed_hid,), jnp.float32),
        "w3": xavier(keys[12], (embed, feed_hid), feed_hid, embed),
        "b3": 0.1 * jax.random.normal(keys[13], (embed,), jnp.float32),
    }

    x = jax.random.normal(keys[14], (batch, seq, embed), jnp.float32)

    prep = prepare_params(params)          # one-time weight stacking/transpose
    out = transformer_block(x, prep, eps=1e-6)
    out = jax.block_until_ready(out)

    ref = _reference_block(x, params, eps=1e-6)
    assert out.shape == x.shape and out.dtype == x.dtype
    assert bool(jnp.all(jnp.isfinite(out)))
    assert jnp.allclose(out, ref, atol=2e-2, rtol=2e-2), \
        float(jnp.max(jnp.abs(out - ref)))

    print("KERNEL_OK")
</pallas_src>

<mosaic_0001>
module attributes {stable_mosaic.version = 11 : i64} {
  func.func @_copy(%arg0: i32, %arg1: memref<8x128xf32, #tpu.memory_space<vmem>>, %arg2: memref<8x128xf32, #tpu.memory_space<vmem>>) attributes {dimension_semantics = [#tpu.dimension_semantics<arbitrary>], iteration_bounds = array<i64: 1>, scalar_prefetch = 0 : i64, scratch_operands = 0 : i64, tpu.core_type = #tpu.core_type<tc>, window_params = [{pipeline_mode = #tpu.pipeline_mode<synchronous>, transform_indices = @transform_0, window_bounds = array<i64: 8, 128>}, {pipeline_mode = #tpu.pipeline_mode<synchronous>, transform_indices = @transform_1, window_bounds = array<i64: 8, 128>}]} {
    %c0 = arith.constant 0 : index
    %c0_0 = arith.constant 0 : index
    %0 = vector.load %arg1[%c0, %c0_0] : memref<8x128xf32, #tpu.memory_space<vmem>>, vector<8x128xf32>
    %c0_1 = arith.constant 0 : index
    %c0_2 = arith.constant 0 : index
    %1 = vector.load %arg2[%c0_1, %c0_2] : memref<8x128xf32, #tpu.memory_space<vmem>>, vector<8x128xf32>
    tpu.vector_store %arg2[%c0_1, %c0_2], %0 {strides = array<i32>} : memref<8x128xf32, #tpu.memory_space<vmem>>, vector<8x128xf32>,
    return
  }
  func.func @transform_0(%arg0: i32) -> (i32, i32) {
    %c0_i32 = arith.constant 0 : i32
    %c0_i32_0 = arith.constant 0 : i32
    %c0_i32_1 = arith.constant 0 : i32
    return %c0_i32, %c0_i32_0 : i32, i32
  }
  func.func @transform_1(%arg0: i32) -> (i32, i32) {
    %c0_i32 = arith.constant 0 : i32
    %c0_i32_0 = arith.constant 0 : i32
    %c0_i32_1 = arith.constant 0 : i32
    return %c0_i32, %c0_i32_0 : i32, i32
  }
}

module attributes {stable_mosaic.version = 11 : i64} {
  func.func @_rmsnorm_qkv_kernel(%arg0: i32, %arg1: memref<16x32xf32, #tpu.memory_space<vmem>>, %arg2: memref<1x32xf32, #tpu.memory_space<vmem>>, %arg3: memref<32x96xf32, #tpu.memory_space<vmem>>, %arg4: memref<1x96xf32, #tpu.memory_space<vmem>>, %arg5: memref<16x32xf32, #tpu.memory_space<vmem>>, %arg6: memref<16x32xf32, #tpu.memory_space<vmem>>, %arg7: memref<16x32xf32, #tpu.memory_space<vmem>>) attributes {dimension_semantics = [#tpu.dimension_semantics<parallel>], iteration_bounds = array<i64: 1>, scalar_prefetch = 0 : i64, scratch_operands = 0 : i64, tpu.core_type = #tpu.core_type<tc>, window_params = [{transform_indices = @transform_0, window_bounds = array<i64: 16, 32>}, {pipeline_mode = #tpu.pipeline_mode<synchronous>, transform_indices = @transform_1, window_bounds = array<i64: 1, 32>}, {pipeline_mode = #tpu.pipeline_mode<synchronous>, transform_indices = @transform_2, window_bounds = array<i64: 32, 96>}, {pipeline_mode = #tpu.pipeline_mode<synchronous>, transform_indices = @transform_3, window_bounds = array<i64: 1, 96>}, {transform_indices = @transform_4, window_bounds = array<i64: 16, 32>}, {transform_indices = @transform_5, window_bounds = array<i64: 16, 32>}, {transform_indices = @transform_6, window_bounds = array<i64: 16, 32>}]} {
    %c0 = arith.constant 0 : index
    %c0_0 = arith.constant 0 : index
    %0 = vector.load %arg1[%c0, %c0_0] : memref<16x32xf32, #tpu.memory_space<vmem>>, vector<16x32xf32>
    %1 = arith.mulf %0, %0 : vector<16x32xf32>
    %cst = arith.constant dense<0.000000e+00> : vector<16xf32>
    %2 = vector.multi_reduction <add>, %1, %cst [1] : vector<16x32xf32> to vector<16xf32>
    %3 = vector.shape_cast %2 : vector<16xf32> to vector<16x1xf32>
    %cst_1 = arith.constant 3.200000e+01 : f32
    %4 = vector.broadcast %cst_1 : f32 to vector<16x1xf32>
    %5 = arith.divf %3, %4 : vector<16x1xf32>
    %cst_2 = arith.constant 9.99999997E-7 : f32
    %6 = vector.broadcast %cst_2 : f32 to vector<16x1xf32>
    %7 = arith.addf %5, %6 : vector<16x1xf32>
    %8 = math.rsqrt %7 : vector<16x1xf32>
    %9 = vector.broadcast %8 : vector<16x1xf32> to vector<16x32xf32>
    %10 = arith.mulf %0, %9 : vector<16x32xf32>
    %c0_3 = arith.constant 0 : index
    %c0_4 = arith.constant 0 : index
    %11 = vector.load %arg2[%c0_3, %c0_4] : memref<1x32xf32, #tpu.memory_space<vmem>>, vector<1x32xf32>
    %12 = vector.broadcast %11 : vector<1x32xf32> to vector<16x32xf32>
    %13 = arith.mulf %10, %12 : vector<16x32xf32>
    %c0_5 = arith.constant 0 : index
    %c0_6 = arith.constant 0 : index
    %14 = vector.load %arg3[%c0_5, %c0_6] : memref<32x96xf32, #tpu.memory_space<vmem>>, vector<32x96xf32>
    %cst_7 = arith.constant dense<0.000000e+00> : vector<16x96xf32>
    %15 = tpu.matmul %13, %14, %cst_7 {dimension_numbers = #tpu.dot_dimension_numbers<[1], [0], [0], [1], [0, 0, 1, 1], [], []>} : vector<16x32xf32>, vector<32x96xf32>, vector<16x96xf32> -> vector<16x96xf32>
    %c0_8 = arith.constant 0 : index
    %c0_9 = arith.constant 0 : index
    %16 = vector.load %arg4[%c0_8, %c0_9] : memref<1x96xf32, #tpu.memory_space<vmem>>, vector<1x96xf32>
    %17 = vector.broadcast %16 : vector<1x96xf32> to vector<16x96xf32>
    %18 = arith.addf %15, %17 : vector<16x96xf32>
    %19 = vector.extract_strided_slice %18 {offsets = [0, 0], sizes = [16, 32], strides = [1, 1]} : vector<16x96xf32> to vector<16x32xf32>
    %c0_10 = arith.constant 0 : index
    %c0_11 = arith.constant 0 : index
    %20 = vector.load %arg5[%c0_10, %c0_11] : memref<16x32xf32, #tpu.memory_space<vmem>>, vector<16x32xf32>
    tpu.vector_store %arg5[%c0_10, %c0_11], %19 {strides = array<i32>} : memref<16x32xf32, #tpu.memory_space<vmem>>, vector<16x32xf32>,
    %21 = vector.extract_strided_slice %18 {offsets = [0, 32], sizes = [16, 32], strides = [1, 1]} : vector<16x96xf32> to vector<16x32xf32>
    %c0_12 = arith.constant 0 : index
    %c0_13 = arith.constant 0 : index
    %22 = vector.load %arg6[%c0_12, %c0_13] : memref<16x32xf32, #tpu.memory_space<vmem>>, vector<16x32xf32>
    tpu.vector_store %arg6[%c0_12, %c0_13], %21 {strides = array<i32>} : memref<16x32xf32, #tpu.memory_space<vmem>>, vector<16x32xf32>,
    %23 = vector.extract_strided_slice %18 {offsets = [0, 64], sizes = [16, 32], strides = [1, 1]} : vector<16x96xf32> to vector<16x32xf32>
    %c0_14 = arith.constant 0 : index
    %c0_15 = arith.constant 0 : index
    %24 = vector.load %arg7[%c0_14, %c0_15] : memref<16x32xf32, #tpu.memory_space<vmem>>, vector<16x32xf32>
    tpu.vector_store %arg7[%c0_14, %c0_15], %23 {strides = array<i32>} : memref<16x32xf32, #tpu.memory_space<vmem>>, vector<16x32xf32>,
    return
  }
  func.func @transform_0(%arg0: i32) -> (i32, i32) {
    %c0_i32 = arith.constant 0 : i32
    %c0_i32_0 = arith.constant 0 : i32
    return %arg0, %c0_i32 : i32, i32
  }
  func.func @transform_1(%arg0: i32) -> (i32, i32) {
    %c0_i32 = arith.constant 0 : i32
    %c0_i32_0 = arith.constant 0 : i32
    %c0_i32_1 = arith.constant 0 : i32
    return %c0_i32, %c0_i32_0 : i32, i32
  }
  func.func @transform_2(%arg0: i32) -> (i32, i32) {
    %c0_i32 = arith.constant 0 : i32
    %c0_i32_0 = arith.constant 0 : i32
    %c0_i32_1 = arith.constant 0 : i32
    return %c0_i32, %c0_i32_0 : i32, i32
  }
  func.func @transform_3(%arg0: i32) -> (i32, i32) {
    %c0_i32 = arith.constant 0 : i32
    %c0_i32_0 = arith.constant 0 : i32
    %c0_i32_1 = arith.constant 0 : i32
    return %c0_i32, %c0_i32_0 : i32, i32
  }
  func.func @transform_4(%arg0: i32) -> (i32, i32) {
    %c0_i32 = arith.constant 0 : i32
    %c0_i32_0 = arith.constant 0 : i32
    return %arg0, %c0_i32 : i32, i32
  }
  func.func @transform_5(%arg0: i32) -> (i32, i32) {
    %c0_i32 = arith.constant 0 : i32
    %c0_i32_0 = arith.constant 0 : i32
    return %arg0, %c0_i32 : i32, i32
  }
  func.func @transform_6(%arg0: i32) -> (i32, i32) {
    %c0_i32 = arith.constant 0 : i32
    %c0_i32_0 = arith.constant 0 : i32
    return %arg0, %c0_i32 : i32, i32
  }
}

</mosaic_0001>

<bundles_post_ra>
// kernel: tpu_custom_call.1
= control target key start
LH: loop header
LB: loop body
LE: loop exit
PB: predicated region body
PF: predicated region fallthrough
CT: control target
= control target key end

     0   :  { %6 = vsyncpa [#allocation3], 0  ;;  %s124_s0 = inlined_call_operand.hbm [shape: f32[8,128], index: 0, kind: input, shape index: {}]   ;;  %s125_s1 = inlined_call_operand.hbm [shape: f32[8,128], index: 1, kind: output, shape index: {}]  }
   0x1   :  { %7 = vsyncpa [#allocation4], 0  ;;  %s88_s6 = smov [#allocation2]   ;;  %s40_s10 = scalar_lea.hbm %s124_s0, 128 }
   0x2   :  { %s14_s7 = sshll.u32 %s88_s6, 4  ;;  %p41_p0 = scmp.ne.s32.totalorder %s124_s0, %s40_s10  ;;  %s15_s7 = int_to_ptr.vmem [resolvable:$true] %s14_s7 }
   0x3   :  { %p44_p1 = scmp.lt.u32.totalorder %s40_s10, %s124_s0 }
   0x5   :  { %p46_p2 = pnand %p44_p1, %p41_p0 }
   0x7   :  { %49 = shalt.err (!%p46_p2)
}
   0x8   :  { %s50_s15 = scalar_lea.vmem %s15_s7, 128  ;;  %p55_p4 = scmp.lt.s32.totalorder %s15_s7, %s15_s7 }
   0x9   :  { %p51_p3 = scmp.ne.s32.totalorder %s15_s7, %s50_s15  ;;  %p56_p5 = scmp.lt.s32.totalorder %s50_s15, %s50_s15 }
   0xb   :  { %p57_p6 = por %p56_p5, %p55_p4 }
   0xd   :  { %p58_p7 = pnand %p57_p6, %p51_p3 }
   0xf   :  { %61 = shalt.err (!%p58_p7)
}
  0x10   :  { %17 = dma.hbm_to_vmem [thread:$0]  %s124_s0, 128, %s15_s7, [#allocation3]  }
  0x11   :  { %84 = dma.done.wait [#allocation3], 128  }
  0x12   :  { %85 = vsyncadd [#allocation3], 4294967168  ;;  %s89_s18 = smov [#allocation5]   ;;  %v21_v0 = vld [vmem:[#allocation2] sm:$0xff] }
  0x13   :  { %s29_s19 = sshll.u32 %s89_s18, 4  ;;  %22 = vst [vmem:[#allocation5] sm:$0xff] %v21_v0  ;;  %s30_s19 = int_to_ptr.vmem [resolvable:$true] %s29_s19 }
  0x14   :  { %s62_s20 = scalar_lea.vmem %s30_s19, 128  ;;  %p67_p9 = scmp.lt.s32.totalorder %s30_s19, %s30_s19 }
  0x15   :  { %p63_p8 = scmp.ne.s32.totalorder %s30_s19, %s62_s20  ;;  %p68_p10 = scmp.lt.s32.totalorder %s62_s20, %s62_s20 }
  0x17   :  { %p69_p11 = por %p68_p10, %p67_p9 }
  0x19   :  { %p70_p12 = pnand %p69_p11, %p63_p8 }
  0x1b   :  { %73 = shalt.err (!%p70_p12)
}
  0x1c   :  { %s74_s23 = scalar_lea.hbm %s125_s1, 128 }
  0x1d   :  { %p75_p13 = scmp.ne.s32.totalorder %s125_s1, %s74_s23  ;;  %p78_p0 = scmp.lt.u32.totalorder %s74_s23, %s125_s1 }
  0x1f   :  { %p80_p1 = pnand %p78_p0, %p75_p13 }
  0x21   :  { %83 = shalt.err (!%p80_p1)
}
  0x22   :  { %32 = dma.vmem_to_hbm [thread:$0]  %s30_s19, 128, %s125_s1, [#allocation4]  }
  0x23   :  { %86 = dma.done.wait [#allocation4], 128  }
  0x24   :  { %87 = vsyncadd [#allocation4], 4294967168 }
  0x25   :  { %36 = vsyncpa [#allocation3], 1 }
  0x26   :  { %37 = vsyncpa [#allocation4], 1 }

// kernel: tpu_custom_call.1
= control target key start
LH: loop header
LB: loop body
LE: loop exit
PB: predicated region body
PF: predicated region fallthrough
CT: control target
= control target key end

     0   :  { %12 = vsyncpa [#allocation3], 0  ;;  %s535_s0 = inlined_call_operand.hbm [shape: f32[16,32], index: 0, kind: input, shape index: {}]   ;;  %s536_s1 = inlined_call_operand.vmem [shape: f32[1,32], index: 1, kind: input, shape index: {}]   ;;  %s537_s2 = inlined_call_operand.hbm [shape: f32[32,96], index: 2, kind: input, shape index: {}]   ;;  %s538_s3 = inlined_call_operand.vmem [shape: f32[1,96], index: 3, kind: input, shape index: {}]   ;;  %s539_s4 = inlined_call_operand.hbm [shape: f32[16,32], index: 4, kind: output, shape index: {0}]   ;;  %s540_s5 = inlined_call_operand.hbm [shape: f32[16,32], index: 5, kind: output, shape index: {1}]   ;;  %s541_s6 = inlined_call_operand.hbm [shape: f32[16,32], index: 6, kind: output, shape index: {2}]  }
   0x1   :  { %13 = vsyncpa [#allocation6], 0 }
   0x2   :  { %14 = vsyncpa [#allocation4], 0 }
   0x3   :  { %15 = vsyncpa [#allocation9], 0  ;;  %s400_s21 = smov [#allocation2]   ;;  %s282_s25 = scalar_lea.hbm %s535_s0, 256 }
   0x4   :  { %s21_s22 = sshll.u32 %s400_s21, 4  ;;  %p283_p0 = scmp.ne.s32.totalorder %s535_s0, %s282_s25  ;;  %s22_s22 = int_to_ptr.vmem [resolvable:$true] %s21_s22 }
   0x5   :  { %p286_p1 = scmp.lt.u32.totalorder %s282_s25, %s535_s0 }
   0x7   :  { %p288_p2 = pnand %p286_p1, %p283_p0 }
   0x9   :  { %291 = shalt.err (!%p288_p2)
}
   0xa   :  { %s292_s30 = scalar_lea.vmem %s22_s22, 256  ;;  %p297_p4 = scmp.lt.s32.totalorder %s22_s22, %s22_s22 }
   0xb   :  { %p293_p3 = scmp.ne.s32.totalorder %s22_s22, %s292_s30  ;;  %p298_p5 = scmp.lt.s32.totalorder %s292_s30, %s292_s30 }
   0xd   :  { %p299_p6 = por %p298_p5, %p297_p4 }
   0xf   :  { %p300_p7 = pnand %p299_p6, %p293_p3 }
  0x11   :  { %303 = shalt.err (!%p300_p7)
}
  0x12   :  { %s401_s7 = smov 128   ;;  %s402_s8 = smov 8  }
  0x13   :  { %27 = dma.hbm_to_vmem [thread:$0]  %s535_s0, 256, %s22_s22, [#allocation3], %s401_s7, %s401_s7, %s402_s8  }
  0x14   :  { %s403_s11 = smov [#allocation5]   ;;  %s304_s15 = scalar_lea.hbm %s537_s2, 512 }
  0x15   :  { %s35_s12 = sshll.u32 %s403_s11, 4  ;;  %p305_p8 = scmp.ne.s32.totalorder %s537_s2, %s304_s15  ;;  %s36_s12 = int_to_ptr.vmem [resolvable:$true] %s35_s12 }
  0x16   :  { %p308_p9 = scmp.lt.u32.totalorder %s304_s15, %s537_s2 }
  0x18   :  { %p310_p10 = pnand %p308_p9, %p305_p8 }
  0x1a   :  { %313 = shalt.err (!%p310_p10)
}
  0x1b   :  { %s314_s20 = scalar_lea.vmem %s36_s12, 512  ;;  %p319_p12 = scmp.lt.s32.totalorder %s36_s12, %s36_s12 }
  0x1c   :  { %p315_p11 = scmp.ne.s32.totalorder %s36_s12, %s314_s20  ;;  %p320_p13 = scmp.lt.s32.totalorder %s314_s20, %s314_s20 }
  0x1e   :  { %p321_p0 = por %p320_p13, %p319_p12 }
  0x20   :  { %p322_p1 = pnand %p321_p0, %p315_p11 }
  0x22   :  { %325 = shalt.err (!%p322_p1)
}
  0x23   :  { %41 = dma.hbm_to_vmem [thread:$0]  %s537_s2, 512, %s36_s12, [#allocation6], %s401_s7, %s401_s7, %s402_s8  }
  0x24   :  { %392 = dma.done.wait [#allocation3], 256  }
  0x25   :  { %393 = vsyncadd [#allocation3], 4294967040 }
  0x26   :  { %394 = dma.done.wait [#allocation6], 512  }
  0x27   :  { %395 = vsyncadd [#allocation6], 4294966784  ;;  %v50_v0 = vld [vmem:[#allocation2] sm:$0xff]  ;;  %vm54_vm0 = vcmask 261120   ;;  %v51_v1 = vld [vmem:[#allocation2 + $0x8] sm:$0xff]  ;;  %s404_s25 = smov [#allocation7]  }
  0x28   :  { %v52_v2 = vmul.f32 %v50_v0, %v50_v0  ;;  %v53_v3 = vmul.f32 %v51_v1, %v51_v1  ;;  %v79_v6 = vld [vmem:[#allocation5] sm:$0xff]  ;;  %v80_v7 = vld [vmem:[#allocation5 + $0x8] sm:$0xff]  ;;  %v81_v8 = vld [vmem:[#allocation5 + $0x10] sm:$0xff]  ;;  %s196_s26 = sshll.u32 %s404_s25, 4  ;;  %s406_s27 = smov 64   ;;  %s197_s26 = int_to_ptr.vmem [resolvable:$true] %s196_s26 }
  0x29   :  { %v261_v9 = vpack.c.bf16 %v80_v7, %v79_v6  ;;  %v82_v10 = vld [vmem:[#allocation5 + $0x18] sm:$0xff]  ;;  %v240_v19 = vld [vmem:[%s536_s1] ss:$0 sm:$0xff]  ;;  %s405_s1 = smov 96   ;;  %s326_s28 = scalar_lea.vmem %s197_s26, 256 }
  0x2a   :  { %v55_v4 = vsel %vm54_vm0, %v52_v2, 0.0  ;;  %v58_v5 = vsel %vm54_vm0, %v53_v3, 0.0  ;;  %v265_v11 = vpack.c.bf16 %v82_v10, %v81_v8  ;;  %v241_v25 = vld [vmem:[%s538_s3] ss:$0 sm:$0xff]  ;;  %p327_p2 = scmp.ne.s32.totalorder %s197_s26, %s326_s28  ;;  %p331_p3 = scmp.lt.s32.totalorder %s197_s26, %s197_s26 }
  0x2b   :  { %56 = vadd.xlane.f32.xlu0 %v55_v4  ;;  %262 = vmatprep.subr.bf16.mxu0 %v261_v9  ;;  %p332_p4 = scmp.lt.s32.totalorder %s326_s28, %s326_s28 }
  0x2c   :  { %264 = vmatpush3.bf16.msra.mxu0 %v261_v9 }
  0x2d   :  { %266 = vmatprep.subr.bf16.mxu0 %v265_v11  ;;  %p333_p5 = por %p332_p4, %p331_p3 }
  0x2f   :  { %59 = vadd.xlane.f32.xlu0 %v58_v5  ;;  %p334_p6 = pnand %p333_p5, %p327_p2 }
  0x30   :  { %268 = vmatpush3.bf16.msra.mxu0 %v265_v11 }
  0xb8   :  { %v57_v12 = vpop.xlane.xlu0 %56 }
  0xb9   :  { %v62_v13 = vmul.f32 0.03125, %v57_v12 }
  0xbb   :  { %v64_v14 = vadd.f32 1e-06, %v62_v13 }
  0xbc   :  { %v60_v15 = vpop.xlane.xlu0 %59 }
  0xbd   :  { %278 = vrsqrt.f32 %v64_v14  ;;  %v63_v16 = vmul.f32 0.03125, %v60_v15 }
  0xbf   :  { %v65_v17 = vadd.f32 1e-06, %v63_v16 }
  0xc1   :  { %280 = vrsqrt.f32 %v65_v17 }
  0xc7   :  { %v279_v18 = vpop.eup %278 }
  0xc8   :  { %v68_v20 = vmul.f32 %v279_v18, %v50_v0 }
  0xca   :  { %v77_v21 = vmul.f32 %v240_v19, %v68_v20 }
  0xcb   :  { %v281_v22 = vpop.eup %280 }
  0xcc   :  { %v69_v23 = vmul.f32 %v281_v22, %v51_v1  ;;  %258 = vmatprep.mubr.msk.f32.mxu0 %vm54_vm0, %v77_v21 }
  0xce   :  { %v78_v24 = vmul.f32 %v240_v19, %v69_v23 }
  0xd0   :  { %259 = vmatmul.mubr.msk.f32.vlgmr.msra.gmra.mrb[0].mxu0 %vm54_vm0, %v78_v24 }
 0x1a3   :  { %v260_v26 = vpop.f32.mrb[0].mxu0 }
 0x1a4   :  { %v168_v27 = vadd.f32 %v260_v26, %v241_v25  ;;  %v162_v28 = vpop.f32.mrb[1].mxu0 }
 0x1a5   :  { %v163_v29 = vadd.f32 %v241_v25, %v162_v28 }
 0x1a6   :  { %172 = vst.msk [vmem:[#allocation7 + $0x8] sm:$0xff] %vm54_vm0, %v168_v27  ;;  %177 = vrot.lane.b32.xlu1 %v168_v27, %s405_s1 }
 0x1a7   :  { %171 = vst.msk [vmem:[#allocation7] sm:$0xff] %vm54_vm0, %v163_v29  ;;  %183 = vrot.lane.b32.xlu0 %v163_v29, %s406_s27 }
 0x1a8   :  { %337 = shalt.err (!%p334_p6)
}
 0x1a9   :  { %s338_s30 = scalar_lea.hbm %s539_s4, 256 }
 0x1aa   :  { %p339_p7 = scmp.ne.s32.totalorder %s539_s4, %s338_s30  ;;  %p342_p8 = scmp.lt.u32.totalorder %s338_s30, %s539_s4 }
 0x1ac   :  { %p344_p9 = pnand %p342_p8, %p339_p7 }
 0x1ae   :  { %347 = shalt.err (!%p344_p9)
}
 0x1af   :  { %202 = dma.vmem_to_hbm [thread:$0]  %s197_s26, 256, %s539_s4, [#allocation4], %s401_s7, %s401_s7, %s402_s8  }
 0x1b0   :  { %175 = vrot.lane.b32.xlu1 %v163_v29, %s405_s1  ;;  %s407_s15 = smov [#allocation8]   ;;  %s408_s17 = smov [#allocation10]  }
 0x1b1   :  { %s208_s16 = sshll.u32 %s407_s15, 4  ;;  %s220_s18 = sshll.u32 %s408_s17, 4  ;;  %s209_s16 = int_to_ptr.vmem [resolvable:$true] %s208_s16  ;;  %s221_s18 = int_to_ptr.vmem [resolvable:$true] %s220_s18 }
 0x1b2   :  { %s348_s19 = scalar_lea.vmem %s209_s16, 256  ;;  %p353_p11 = scmp.lt.s32.totalorder %s209_s16, %s209_s16 }
 0x1b3   :  { %p349_p10 = scmp.ne.s32.totalorder %s209_s16, %s348_s19  ;;  %p354_p12 = scmp.lt.s32.totalorder %s348_s19, %s348_s19 }
 0x1b4   :  { %185 = vrot.lane.b32.xlu1 %v168_v27, %s406_s27 }
 0x1b5   :  { %p355_p13 = por %p354_p12, %p353_p11 }
 0x1b7   :  { %p356_p0 = pnand %p355_p13, %p349_p10 }
 0x218   :  { %v178_v30 = vpop.permute.xlu1 %177 }
 0x219   :  { %182 = vst.msk [vmem:[#allocation8 + $0x8] sm:$0xff] %vm54_vm0, %v178_v30  ;;  %v184_v31 = vpop.permute.xlu0 %183 }
 0x21a   :  { %189 = vst.msk [vmem:[#allocation10] sm:$0xff] %vm54_vm0, %v184_v31 }
 0x222   :  { %v176_v32 = vpop.permute.xlu1 %175 }
 0x223   :  { %181 = vst.msk [vmem:[#allocation8] sm:$0xff] %vm54_vm0, %v176_v32 }
 0x224   :  { %359 = shalt.err (!%p356_p0)
}
 0x225   :  { %s360_s0 = scalar_lea.hbm %s540_s5, 256 }
 0x226   :  { %p361_p1 = scmp.ne.s32.totalorder %s540_s5, %s360_s0  ;;  %p364_p2 = scmp.lt.u32.totalorder %s360_s0, %s540_s5 }
 0x228   :  { %p366_p3 = pnand %p364_p2, %p361_p1 }
 0x22a   :  { %369 = shalt.err (!%p366_p3)
}
 0x22b   :  { %214 = dma.vmem_to_hbm [thread:$0]  %s209_s16, 256, %s540_s5, [#allocation9], %s401_s7, %s401_s7, %s402_s8   ;;  %v186_v33 = vpop.permute.xlu1 %185 }
 0x22c   :  { %190 = vst.msk [vmem:[#allocation10 + $0x8] sm:$0xff] %vm54_vm0, %v186_v33  ;;  %s370_s26 = scalar_lea.vmem %s221_s18, 256  ;;  %p375_p5 = scmp.lt.s32.totalorder %s221_s18, %s221_s18 }
 0x22d   :  { %p371_p4 = scmp.ne.s32.totalorder %s221_s18, %s370_s26  ;;  %p376_p6 = scmp.lt.s32.totalorder %s370_s26, %s370_s26 }
 0x22f   :  { %p377_p7 = por %p376_p6, %p375_p5 }
 0x231   :  { %p378_p8 = pnand %p377_p7, %p371_p4 }
 0x233   :  { %381 = shalt.err (!%p378_p8)
}
 0x234   :  { %s382_s28 = scalar_lea.hbm %s541_s6, 256 }
 0x235   :  { %p383_p9 = scmp.ne.s32.totalorder %s541_s6, %s382_s28  ;;  %p386_p10 = scmp.lt.u32.totalorder %s382_s28, %s541_s6 }
 0x237   :  { %p388_p11 = pnand %p386_p10, %p383_p9 }
 0x239   :  { %391 = shalt.err (!%p388_p11)
}
 0x23a   :  { %226 = dma.vmem_to_hbm [thread:$0]  %s221_s18, 256, %s541_s6, [#allocation9], %s401_s7, %s401_s7, %s402_s8  }
 0x23b   :  { %396 = dma.done.wait [#allocation4], 256  }
 0x23c   :  { %397 = vsyncadd [#allocation4], 4294967040 }
 0x23d   :  { %398 = dma.done.wait [#allocation9], 512  }
 0x23e   :  { %399 = vsyncadd [#allocation9], 4294966784 }
 0x23f   :  { %236 = vsyncpa [#allocation3], 1 }
 0x240   :  { %237 = vsyncpa [#allocation6], 1 }
 0x241   :  { %238 = vsyncpa [#allocation4], 1 }
 0x242   :  { %239 = vsyncpa [#allocation9], 1 }

</bundles_post_ra>
